<compile_context>
chip_gen: v6e
topology: v6e:2x2x1
jax: 0.10.0
libtpu: 0.0.40
codegen_flags: <defaults>
</compile_context>

<pallas_src>
import functools

import jax
import jax.numpy as jnp
from jax import lax
from jax.experimental import pallas as pl
from jax.experimental.pallas import tpu as pltpu


def _round_up(x, m):
    return (x + m - 1) // m * m


def _max_tile():
    """1024-wide tiles on 128-MiB-VMEM parts (v5e/v6e), 512 otherwise (v7x)."""
    try:
        info = pltpu.get_tpu_info()
        if getattr(info, "vmem_capacity_bytes", 0) >= (100 << 20):
            return 1024
    except Exception:
        pass
    return 512


def _decoder_kernel(x_ref, w_ref, b_ref, o_ref, *, transpose, hidden, tk, mask_k):
    # x_ref: (tm, tk) bf16 |x| block          w_ref: (tn, tk) bf16 weight block
    # b_ref: (1, tn) or (tn, 1) f32 bias      o_ref: (tm, tn) or (tn, tm) f32
    k = pl.program_id(3)

    x = x_ref[...]
    w = w_ref[...]
    if mask_k:
        # Ragged K tail: the OOB columns of both operands hold garbage; zero
        # them so the reduction over K is exact (cheap VPU selects).
        rem = hidden - k * tk
        x = jnp.where(lax.broadcasted_iota(jnp.int32, x.shape, 1) < rem,
                      x, jnp.zeros_like(x))
        w = jnp.where(lax.broadcasted_iota(jnp.int32, w.shape, 1) < rem,
                      w, jnp.zeros_like(w))

    # NT matmul (contraction over the minor dim of both operands).
    if transpose:
        contrib = lax.dot_general(w, x, (((1,), (1,)), ((), ())),
                                  preferred_element_type=jnp.float32)  # (tn, tm)
    else:
        contrib = lax.dot_general(x, w, (((1,), (1,)), ((), ())),
                                  preferred_element_type=jnp.float32)  # (tm, tn)

    @pl.when(k == 0)
    def _():
        # The resident output block doubles as the accumulator; seed with bias.
        o_ref[...] = jnp.broadcast_to(b_ref[...], o_ref.shape)

    o_ref[...] += contrib


@functools.partial(jax.jit, static_argnames=("transpose",))
def base_complex_to_real(x_complex, weight, bias, transpose=False):
    """x_complex: complex64 (B, S, H); weight: (O, H) PyTorch layout; bias: (O,)."""
    B, S, H = x_complex.shape
    O = weight.shape[0]

    # One fused elementwise pass over the complex input; bf16 feed for the MXU.
    mag = jnp.abs(x_complex).astype(jnp.bfloat16)

    if transpose:
        bg, sg = B, S
        out_shape = (B, O, S)
        bias2d = bias.astype(jnp.float32).reshape(O, 1)
    else:
        # Flatten (B, S) into one row axis for bigger, fewer row tiles.
        bg, sg = 1, B * S
        mag = mag.reshape(1, sg, H)
        out_shape = (1, sg, O)
        bias2d = bias.astype(jnp.float32).reshape(1, O)

    w_bf16 = weight.astype(jnp.bfloat16)  # (O, H) PyTorch layout (NT matmul)

    max_tile = _max_tile()
    tm = sg if sg <= max_tile else max_tile
    tk = H if H <= max_tile else max_tile
    # Cover all of O with one tile whenever it fits so activations stream from
    # HBM exactly once.
    # TODO(synk): for O > 1024, keep the whole bf16 weight resident (constant
    # index_map) instead of re-fetching it per row tile when it fits VMEM.
    tn = O if O <= 1024 else 512

    # Megacore: make sure at least one "parallel" grid axis has >= 2 tiles.
    if (not transpose
            and bg * ((sg + tm - 1) // tm) * ((O + tn - 1) // tn) == 1
            and sg >= 16):
        tm = _round_up((sg + 1) // 2, 8)
    # TODO(synk): equivalent split for transpose=True with B == 1 (needs a
    # 128-aligned row tile because rows land on output lanes there).

    kg = pl.cdiv(H, tk)
    mask_k = (H % tk) != 0
    grid = (bg, pl.cdiv(sg, tm), pl.cdiv(O, tn), kg)

    if transpose:
        bias_spec = pl.BlockSpec((tn, 1), lambda b, i, j, k: (j, 0))
        out_spec = pl.BlockSpec((None, tn, tm), lambda b, i, j, k: (b, j, i))
    else:
        bias_spec = pl.BlockSpec((1, tn), lambda b, i, j, k: (0, j))
        out_spec = pl.BlockSpec((None, tm, tn), lambda b, i, j, k: (b, i, j))

    kernel = functools.partial(_decoder_kernel, transpose=transpose,
                               hidden=H, tk=tk, mask_k=mask_k)

    cp_kwargs = dict(
        dimension_semantics=("parallel", "parallel", "parallel", "arbitrary"))
    if max_tile >= 1024:
        cp_kwargs["vmem_limit_bytes"] = 64 << 20

    out = pl.pallas_call(
        kernel,
        out_shape=jax.ShapeDtypeStruct(out_shape, jnp.float32),
        grid_spec=pltpu.PrefetchScalarGridSpec(
            num_scalar_prefetch=0,
            grid=grid,
            in_specs=[
                pl.BlockSpec((None, tm, tk), lambda b, i, j, k: (b, i, k)),  # |x|
                pl.BlockSpec((tn, tk), lambda b, i, j, k: (j, k)),           # weight
                bias_spec,                                                   # bias
            ],
            out_specs=out_spec,
        ),
        compiler_params=pltpu.CompilerParams(**cp_kwargs),
    )(mag, w_bf16, bias2d)

    if not transpose:
        out = out.reshape(B, S, O)
    return out


def _reference(x_complex, weight, bias, transpose=False):
    mag = jnp.abs(x_complex).astype(jnp.float32)
    y = jnp.einsum("bsh,oh->bso", mag, weight) + bias
    if transpose:
        y = jnp.transpose(y, (0, 2, 1))
    return y


if __name__ == "__main__":
    B, S, H, O = 2, 8, 32, 32

    key = jax.random.PRNGKey(0)
    k_re, k_im, k_w, k_b = jax.random.split(key, 4)

    x = (jax.random.normal(k_re, (B, S, H), dtype=jnp.float32)
         + 1j * jax.random.normal(k_im, (B, S, H), dtype=jnp.float32)
         ).astype(jnp.complex64)

    # deterministic decoder (nn.Linear(H, O)) parameters
    bound = 1.0 / (H ** 0.5)
    weight = jax.random.uniform(k_w, (O, H), jnp.float32, -bound, bound)
    bias = jax.random.uniform(k_b, (O,), jnp.float32, -bound, bound)

    for transpose in (False, True):
        y = base_complex_to_real(x, weight, bias, transpose=transpose)
        y = jax.block_until_ready(y)
        y_ref = _reference(x, weight, bias, transpose=transpose)
        assert y.shape == y_ref.shape, (y.shape, y_ref.shape)
        # bf16 MXU inputs with f32 accumulation -> loosened tolerance.
        err = float(jnp.max(jnp.abs(y - y_ref)))
        assert jnp.allclose(y, y_ref, atol=5e-2, rtol=5e-2), err

    print("KERNEL_OK")
</pallas_src>

<mosaic_0001>
module attributes {stable_mosaic.version = 11 : i64} {
  func.func @_decoder_kernel(%arg0: i32, %arg1: i32, %arg2: i32, %arg3: i32, %arg4: memref<1x8x32xbf16, #tpu.memory_space<vmem>>, %arg5: memref<32x32xbf16, #tpu.memory_space<vmem>>, %arg6: memref<1x32xf32, #tpu.memory_space<vmem>>, %arg7: memref<1x8x32xf32, #tpu.memory_space<vmem>>) attributes {dimension_semantics = [#tpu.dimension_semantics<parallel>, #tpu.dimension_semantics<parallel>, #tpu.dimension_semantics<parallel>, #tpu.dimension_semantics<arbitrary>], iteration_bounds = array<i64: 1, 2, 1, 1>, scalar_prefetch = 0 : i64, scratch_operands = 0 : i64, tpu.core_type = #tpu.core_type<tc>, window_params = [{transform_indices = @transform_0, window_bounds = array<i64: 1, 8, 32>}, {transform_indices = @transform_1, window_bounds = array<i64: 32, 32>}, {transform_indices = @transform_2, window_bounds = array<i64: 1, 32>}, {transform_indices = @transform_3, window_bounds = array<i64: 1, 8, 32>}]} {
    %c0 = arith.constant 0 : index
    %c0_0 = arith.constant 0 : index
    %c0_1 = arith.constant 0 : index
    %0 = vector.load %arg4[%c0, %c0_0, %c0_1] : memref<1x8x32xbf16, #tpu.memory_space<vmem>>, vector<1x8x32xbf16>
    %1 = vector.shape_cast %0 : vector<1x8x32xbf16> to vector<8x32xbf16>
    %c0_2 = arith.constant 0 : index
    %c0_3 = arith.constant 0 : index
    %2 = vector.load %arg5[%c0_2, %c0_3] : memref<32x32xbf16, #tpu.memory_space<vmem>>, vector<32x32xbf16>
    %cst = arith.constant dense<0.000000e+00> : vector<8x32xf32>
    %3 = tpu.matmul %1, %2, %cst {dimension_numbers = #tpu.dot_dimension_numbers<[1], [1], [0], [0], [0, 0, 1, 0], [], []>} : vector<8x32xbf16>, vector<32x32xbf16>, vector<8x32xf32> -> vector<8x32xf32>
    %c0_i32 = arith.constant 0 : i32
    %4 = arith.cmpi eq, %arg3, %c0_i32 : i32
    %5 = arith.extui %4 : i1 to i32
    %c0_i32_4 = arith.constant 0 : i32
    %6 = arith.cmpi ne, %5, %c0_i32_4 : i32
    scf.if %6 {
      %c0_11 = arith.constant 0 : index
      %c0_12 = arith.constant 0 : index
      %13 = vector.load %arg6[%c0_11, %c0_12] : memref<1x32xf32, #tpu.memory_space<vmem>>, vector<1x32xf32>
      %14 = vector.shape_cast %13 : vector<1x32xf32> to vector<1x32xf32>
      %15 = vector.broadcast %14 : vector<1x32xf32> to vector<8x32xf32>
      %c0_13 = arith.constant 0 : index
      %c0_14 = arith.constant 0 : index
      %c0_15 = arith.constant 0 : index
      %16 = vector.load %arg7[%c0_13, %c0_14, %c0_15] : memref<1x8x32xf32, #tpu.memory_space<vmem>>, vector<1x8x32xf32>
      %17 = vector.shape_cast %16 : vector<1x8x32xf32> to vector<8x32xf32>
      %18 = vector.shape_cast %15 : vector<8x32xf32> to vector<1x8x32xf32>
      tpu.vector_store %arg7[%c0_13, %c0_14, %c0_15], %18 {strides = array<i32>} : memref<1x8x32xf32, #tpu.memory_space<vmem>>, vector<1x8x32xf32>,
    } else {
    }
    %c0_5 = arith.constant 0 : index
    %c0_6 = arith.constant 0 : index
    %c0_7 = arith.constant 0 : index
    %7 = vector.load %arg7[%c0_5, %c0_6, %c0_7] : memref<1x8x32xf32, #tpu.memory_space<vmem>>, vector<1x8x32xf32>
    %8 = vector.shape_cast %7 : vector<1x8x32xf32> to vector<8x32xf32>
    %9 = arith.addf %8, %3 : vector<8x32xf32>
    %c0_8 = arith.constant 0 : index
    %c0_9 = arith.constant 0 : index
    %c0_10 = arith.constant 0 : index
    %10 = vector.load %arg7[%c0_8, %c0_9, %c0_10] : memref<1x8x32xf32, #tpu.memory_space<vmem>>, vector<1x8x32xf32>
    %11 = vector.shape_cast %10 : vector<1x8x32xf32> to vector<8x32xf32>
    %12 = vector.shape_cast %9 : vector<8x32xf32> to vector<1x8x32xf32>
    tpu.vector_store %arg7[%c0_8, %c0_9, %c0_10], %12 {strides = array<i32>} : memref<1x8x32xf32, #tpu.memory_space<vmem>>, vector<1x8x32xf32>,
    return
  }
  func.func @transform_0(%arg0: i32, %arg1: i32, %arg2: i32, %arg3: i32) -> (i32, i32, i32) {
    %c0_i32 = arith.constant 0 : i32
    return %arg0, %arg1, %arg3 : i32, i32, i32
  }
  func.func @transform_1(%arg0: i32, %arg1: i32, %arg2: i32, %arg3: i32) -> (i32, i32) {
    %c0_i32 = arith.constant 0 : i32
    return %arg2, %arg3 : i32, i32
  }
  func.func @transform_2(%arg0: i32, %arg1: i32, %arg2: i32, %arg3: i32) -> (i32, i32) {
    %c0_i32 = arith.constant 0 : i32
    %c0_i32_0 = arith.constant 0 : i32
    return %c0_i32, %arg2 : i32, i32
  }
  func.func @transform_3(%arg0: i32, %arg1: i32, %arg2: i32, %arg3: i32) -> (i32, i32, i32) {
    %c0_i32 = arith.constant 0 : i32
    return %arg0, %arg1, %arg2 : i32, i32, i32
  }
}

</mosaic_0001>

<bundles_post_ra>
// kernel: custom-call.1
= control target key start
LH: loop header
LB: loop body
LE: loop exit
PB: predicated region body
PF: predicated region fallthrough
CT: control target
= control target key end

     0   :  { %s51_s0 = inlined_call_operand.hbm [shape: c64[2,8,32], index: 0, kind: input, shape index: {}]   ;;  %s52_s1 = inlined_call_operand.vmem [shape: f32[2,8,32], index: 1, kind: output, shape index: {}]  }
   0x1   :  { %s2_s8 = scalar_lea.hbm %s51_s0, 256 }
   0x2   :  { %3 = vsyncpa [#allocation0], 0  ;;  %s4_s11 = sshll.u32 %s52_s1, 4  ;;  %s5_s11 = int_to_ptr.vmem [resolvable:$true] %s4_s11 }
   0x3   :  { %s20_s12 = scalar_lea.vmem %s5_s11, 256  ;;  %p25_p1 = scmp.lt.s32.totalorder %s5_s11, %s5_s11 }
   0x4   :  { %p21_p0 = scmp.ne.s32.totalorder %s5_s11, %s20_s12  ;;  %p26_p2 = scmp.lt.s32.totalorder %s20_s12, %s20_s12 }
   0x6   :  { %p27_p3 = por %p26_p2, %p25_p1 }
   0x8   :  { %p28_p4 = pnand %p27_p3, %p21_p0 }
   0xa   :  { %31 = shalt.err (!%p28_p4)  }
   0xb   :  { %7 = dma.hbm_to_vmem [thread:$0]  %s2_s8, 256, %s5_s11, [#allocation0] }
   0xc   :  { %33 = dma.done.wait [#allocation0], 256  }
   0xd   :  { %34 = vsyncadd [#allocation0], 4294967040 }
   0xe   :  { %9 = vsyncpa [#allocation0], 1 }

// kernel: custom-call
= control target key start
LH: loop header
LB: loop body
LE: loop exit
PB: predicated region body
PF: predicated region fallthrough
CT: control target
= control target key end

     0   :  { %2 = vsyncpa [#allocation0], 0  ;;  %s47_s0 = inlined_call_operand.hbm [shape: c64[2,8,32], index: 0, kind: input, shape index: {}]   ;;  %s48_s1 = inlined_call_operand.vmem [shape: f32[2,8,32], index: 1, kind: output, shape index: {}]  }
   0x1   :  { %s3_s8 = sshll.u32 %s48_s1, 4  ;;  %s4_s8 = int_to_ptr.vmem [resolvable:$true] %s3_s8 }
   0x2   :  { %s17_s9 = scalar_lea.vmem %s4_s8, 256  ;;  %p22_p1 = scmp.lt.s32.totalorder %s4_s8, %s4_s8 }
   0x3   :  { %p18_p0 = scmp.ne.s32.totalorder %s4_s8, %s17_s9  ;;  %p23_p2 = scmp.lt.s32.totalorder %s17_s9, %s17_s9 }
   0x5   :  { %p24_p3 = por %p23_p2, %p22_p1 }
   0x7   :  { %p25_p4 = pnand %p24_p3, %p18_p0 }
   0x9   :  { %28 = shalt.err (!%p25_p4)  }
   0xa   :  { %6 = dma.hbm_to_vmem [thread:$0]  %s47_s0, 256, %s4_s8, [#allocation0] }
   0xb   :  { %29 = dma.done.wait [#allocation0], 256  }
   0xc   :  { %30 = vsyncadd [#allocation0], 4294967040 }
   0xd   :  { %8 = vsyncpa [#allocation0], 1 }

// kernel: base_complex_to_real.1
= control target key start
LH: loop header
LB: loop body
LE: loop exit
PB: predicated region body
PF: predicated region fallthrough
CT: control target
= control target key end

     0   :  { %8 = vsyncpa [#allocation3], 0  ;;  %s794_s0 = inlined_call_operand.vmem [shape: bf16[1,16,32], index: 0, kind: input, shape index: {}]   ;;  %s795_s1 = inlined_call_operand.vmem [shape: bf16[32,32], index: 1, kind: input, shape index: {}]   ;;  %s796_s2 = inlined_call_operand.vmem [shape: f32[1,32], index: 2, kind: input, shape index: {}]   ;;  %s797_s3 = inlined_call_operand.hbm [shape: f32[1,16,32], index: 3, kind: output, shape index: {}]  }
   0x1   :  { %10 = vsyncpa [#allocation3 + $0x1], 0  ;;  %s669_s12 = smov 0   ;;  %s671_s13 = smov 0  }
   0x2   :  { %s673_s14 = smov 0   ;;  %s675_s15 = smov 0  }
   0x3   :  { %s677_s16 = smov 0   ;;  %s679_s17 = smov 0  }
   0x4 LB: > { %s481_s18 = sadd.s32 4294967295, %s644_s17   ;;  %s482_s19 = sadd.s32 4294967294, %s644_s17   ;;  %s644_s17 = sphi %s679_s17, %s16_s17   ;;  %s640_s16 = sphi %s677_s16, %s804_s16   ;;  %s636_s15 = sphi %s675_s15, %s803_s15   ;;  %s632_s14 = sphi %s673_s14, %s802_s14   ;;  %s628_s13 = sphi %s671_s13, %s801_s13   ;;  %s624_s12 = sphi %s669_s12, %s800_s12  }
   0x5   : > { %s38_s20 = sadd.s32 1, %s640_s16  ;;  %s137_s21 = sadd.s32 1, %s632_s14 }
   0x6   : > { %p40_p0 = scmp.ge.s32.totalorder %s38_s20, 2  ;;  %p147_p1 = scmp.ne.s32.totalorder %s632_s14, %s628_s13 }
   0x7   : > { %p148_p2 = scmp.eq.s32.totalorder %s481_s18, 1  ;;  %p153_p3 = scmp.ne.s32.totalorder %s628_s13, %s624_s12 }
   0x8   : > { %s806_s20 = smov (%p40_p0, %s38_s20), 0  ;;  %p154_p5 = scmp.eq.s32.totalorder %s482_s19, 1 }
   0x9   : > { %p709_p4 = por %p148_p2, %p147_p1  ;;  %s131_s23 = ssub.s32 %s640_s16, %s806_s20 }
   0xa   : > { %p487_p6 = scmp.ge.s32.totalorder %s644_s17, 1  ;;  %p135_p7 = scmp.eq.s32.totalorder %s131_s23, 0 }
   0xb   : > { %p716_p8 = por %p154_p5, %p153_p3  ;;  %p204_p9 = scmp.lt.s32.totalorder %s644_s17, 3 }
   0xc   : > { %s722_s25 = scalar_select %p135_p7, %s632_s14, %s137_s21  }
   0xd   : > { %p205_p10 = pnand %p487_p6, %p204_p9 }
   0xe   : > { %p247_p11 = scmp.lt.s32.totalorder (!%p205_p10), %s636_s15, 1  ;;  %s242_s8 = sand.u32 (!%p205_p10), 1, %s628_s13  }
   0xf   : > { %208 = sbr.rel (%p205_p10) target bundleno = 246 (0xf6), region = 32  ;;  %s488_s9 = sshll.u32 (!%p205_p10), %s242_s8, 3 }
  0x10   : > { %s244_s18 = scalar_lea.vmem (!%p205_p10), [#allocation2], %s488_s9  ;;  %s495_s19 = sshll.u32 (!%p205_p10), %s636_s15, 7 }
  0x11   : > { %s366_s21 = sshll.u32 (!%p205_p10), %s244_s18, 4  ;;  %s747_s27 = scalar_lea.hbm (!%p205_p10), %s797_s3, %s495_s19  ;;  %s749_s21 = int_to_ptr.vmem [resolvable:$true] %s366_s21 }
  0x12   : > { %s350_s28 = scalar_lea.sflag (!%p205_p10), [#allocation3], %s242_s8  ;;  %s568_s29 = scalar_lea.vmem (!%p205_p10), %s749_s21, 128 }
  0x13   : > { %p569_p12 = scmp.ne.s32.totalorder (!%p205_p10), %s749_s21, %s568_s29 }
  0x14   : > { %v566_v0 = vld [vmem:[%s795_s1 + $0x8] sm:$0xff]   ;;  %v646_v1 = vmov 0.0   ;;  %vm284_vm0 = vcmask 261120   ;;  %vm647_vm1 = vmmov 0   ;;  %v567_v3 = vld [vmem:[%s795_s1] sm:$0xff]   ;;  %s248_s30 = scalar_select %p247_p11, %s636_s15, 1 }
  0x15   : > { %501 = vmatprep.subr.bf16.mxu0 %v646_v1  ;;  %v292_v2 = vsel %vm284_vm0, %v566_v0, 0  ;;  %505 = vmatprep.mubr.msk.bf16.mxu0 %vm647_vm1, %v646_v1  ;;  %v289_v4 = vsel %vm284_vm0, %v567_v3, 0  ;;  %v493_v6 = vld [vmem:[%s796_s2] ss:$0 sm:$0xff]  ;;  %p570_p13 = pnand %p569_p12, %p709_p4  ;;  %s648_s15 = smov [#allocation2]  }
  0x16   : > { %502 = vmatpush3.bf16.xpose.msra.mxu0 %v292_v2  ;;  %s489_s4 = sshll.u32 %s248_s30, 2  ;;  %345 = vst.msk [vmem:[%s244_s18] sm:$0xff] %vm284_vm0, %v493_v6  ;;  %s572_s30 = sshll.u32 %s648_s15, 4  ;;  %s573_s30 = int_to_ptr.vmem [resolvable:$false] %s572_s30 }
  0x17   : > { %503 = vmatprep.subr.bf16.mxu0 %v646_v1  ;;  %s255_s7 = scalar_lea.vmem %s794_s0, %s489_s4  ;;  %p571_p0 = pneg %p570_p13 }
  0x18   : > { %v269_v5 = vld [vmem:[%s255_s7] sm:$0xf]  ;;  %s574_s4 = scalar_lea.vmem %s573_s30, 256  ;;  %p575_p1 = scmp.lt.s32.totalorder %s749_s21, %s573_s30 }
  0x19   : > { %p576_p2 = scmp.lt.s32.totalorder %s574_s4, %s568_s29 }
  0x1b   : > { %p577_p3 = por %p576_p2, %p575_p1 }
  0x1d   : > { %v346_v7 = vld [vmem:[%s244_s18] sm:$0xff]  ;;  %p578_p5 = pnand %p577_p3, %p571_p0 }
  0x1e   : > { %504 = vmatpush3.bf16.xpose.msra.mxu0 %v289_v4 }
  0x25   : > { %506 = vmatmul.mubr.msk.bf16.vlgmr.msra.gmra.mxu0 %vm284_vm0, %v269_v5 }
  0xe5   : > { %v328_v8 = vpop.f32.mrf.mxu0 }
  0xe6   : > { %v347_v9 = vadd.f32 %v346_v7, %v328_v8 }
  0xe7   : > { %v507_v10 = vpop.f32.mrf.mxu0 }
  0xe8   : > { %348 = vst.msk [vmem:[%s244_s18] sm:$0xff] %vm284_vm0, %v347_v9 }
  0xe9   : > { %v331_v11 = vpop.f32.mrf.mxu0 }
  0xea   : > { %581 = shalt.err (!%p578_p5)
}
  0xeb   : > { %s582_s5 = scalar_lea.hbm %s747_s27, 128  ;;  %s586_s8 = scalar_lea.hbm %s797_s3, 256 }
  0xec   : > { %p583_p6 = scmp.ne.s32.totalorder %s747_s27, %s582_s5  ;;  %p587_p10 = scmp.lt.s32.totalorder %s747_s27, %s797_s3 }
  0xed   : > { %p588_p11 = scmp.lt.s32.totalorder %s586_s8, %s582_s5 }
  0xee   : > { %p584_p7 = pnand %p583_p6, %p709_p4 }
  0xef   : > { %p589_p12 = por %p588_p11, %p587_p10 }
  0xf0   : > { %p585_p9 = pneg %p584_p7 }
  0xf2   : > { %p590_p13 = pnand %p589_p12, %p585_p9 }
  0xf4   : > { %593 = shalt.err (!%p590_p13)
}
  0xf5   : > { %509 = dma.vmem_to_hbm [thread:$0]  (%p709_p4), %s749_s21, 128, %s747_s27, %s350_s28   ;;  %v508_v12 = vpop.f32.mrf.mxu0 }
  0xf6 PF: > { %p515_p0 = scmp.ge.s32.totalorder %s644_s17, 2  ;;  %s378_s11 = sand.u32 1, %s624_s12  }
  0xf7   : > { %s379_s18 = scalar_lea.sflag [#allocation3], %s378_s11 }
  0xf8   : > { %p512_p1 = pnand %p515_p0, %p716_p8 }
  0xfa   : > { %p513_p2 = pneg %p512_p1 }
  0xfc   : > { %619 = dma.done.wait (%p513_p2), %s379_s18, 128  }
  0xfd   : > { %621 = vsyncadd (%p513_p2), %s379_s18, 4294967168  ;;  %s16_s17 = sadd.s32 1, %s644_s17   ;;  %s800_s12 = smov %s628_s13 }
  0xfe   : > { %p13_p3 = scmp.ge.s32.totalorder %s16_s17, 4   ;;  %s801_s13 = smov %s632_s14 }
  0xff   : > { %s802_s14 = smov %s722_s25  ;;  %s803_s15 = smov %s640_s16 }
 0x100   : > { %s804_s16 = smov %s806_s20  ;;  %15 = sbr.rel (!%p13_p3) target bundleno = 4 (0x4), region = 77 }
 0x105   :  { %384 = vsyncpa [#allocation3], 1 }
 0x106   :  { %386 = vsyncpa [#allocation3 + $0x1], 1 }

</bundles_post_ra>
